<compile_context>
chip_gen: v6e
topology: v6e:2x2x1
jax: 0.10.0
libtpu: 0.0.40
codegen_flags: <defaults>
</compile_context>

<pallas_src>
import jax
import jax.numpy as jnp
from jax.experimental import pallas as pl
from jax.experimental.pallas import tpu as pltpu

# ---- packed-parameter layout -------------------------------------------------
HIDDEN_PAD = 128            # hidden=20 padded to one full lane width
OUT_PAD = 128               # out=10 padded to one full lane width
VEC_ROWS = 8                # f32 block: rows 0..3 = w1-row, b1, b2, b3; rows 4..7 zero
W_ROWS = 2 * HIDDEN_PAD     # bf16 block: rows 0..127 = w2, rows 128..255 = w3


def mlp_kernel(x_ref, vec_ref, w_ref, o_ref):
    """One (TM, 1) batch tile through the fused 3-layer MLP."""
    x = x_ref[...]                          # (TM, 1) f32
    vecs = vec_ref[...]                     # (8, 128) f32 — one vreg, loaded once
    w1 = vecs[0:1, :]                       # (1, 128) first-layer weight row (in_dim == 1)
    b1 = vecs[1:2, :]
    b2 = vecs[2:3, :]
    b3 = vecs[3:4, :]
    w2 = w_ref[0:HIDDEN_PAD, :]             # (128, 128) bf16, 16-row aligned slice
    w3 = w_ref[HIDDEN_PAD:W_ROWS, :]        # (128, 128) bf16, starts at row 128 (16-aligned)

    # lin1 + ReLU: K == 1, pure VPU lane-broadcast outer product (no MXU), f32.
    h1 = jnp.maximum(x * w1 + b1, 0.0)                                   # (TM, 128) f32

    # lin2 + ReLU: bf16 operands at native MXU rate, f32 accumulate; elementwise f32.
    h2 = jnp.dot(h1.astype(jnp.bfloat16), w2,
                 preferred_element_type=jnp.float32) + b2
    h2 = jnp.maximum(h2, 0.0)                                            # (TM, 128) f32

    # fc + sigmoid: exp and approx reciprocal both ride the EUP slot.
    y = jnp.dot(h2.astype(jnp.bfloat16), w3,
                preferred_element_type=jnp.float32) + b3                 # (TM, 128) f32
    o_ref[...] = pl.reciprocal(1.0 + jnp.exp(-y), approx=True).astype(o_ref.dtype)


def pack_params(params):
    """Pack the (pre-transposed [in, out]) weights and (1, out) biases into:
         vec_f32 : (8, 128)  f32  — w1 row, b1, b2, b3, zero padding
         w_bf16  : (256, 128) bf16 — w2 (rows 0..127), w3 (rows 128..255)
       Do this ONCE and reuse across calls (weights-stationary; two small DMAs
       per kernel call, resident across the batch grid)."""
    w1, b1 = params["w1"], params["b1"]
    w2, b2 = params["w2"], params["b2"]
    w3, b3 = params["w3"], params["b3"]
    assert w1.shape[0] == 1, "kernel specializes the first layer for in_dim == 1"
    hidden = w1.shape[1]
    out_dim = w3.shape[1]

    def pad_cols(a, width):
        return jnp.pad(a, ((0, 0), (0, width - a.shape[1])))

    vec_f32 = jnp.concatenate(
        [
            pad_cols(w1, HIDDEN_PAD),                      # row 0 : w1 (1 x hidden -> 1 x 128)
            pad_cols(b1, HIDDEN_PAD),                      # row 1 : b1
            pad_cols(b2, HIDDEN_PAD),                      # row 2 : b2
            pad_cols(b3, OUT_PAD),                         # row 3 : b3
            jnp.zeros((VEC_ROWS - 4, HIDDEN_PAD), jnp.float32),
        ],
        axis=0,
    ).astype(jnp.float32)
    w2_block = jnp.pad(w2, ((0, HIDDEN_PAD - hidden), (0, HIDDEN_PAD - hidden)))
    w3_block = jnp.pad(w3, ((0, HIDDEN_PAD - hidden), (0, OUT_PAD - out_dim)))
    w_bf16 = jnp.concatenate([w2_block, w3_block], axis=0).astype(jnp.bfloat16)

    assert vec_f32.shape == (VEC_ROWS, HIDDEN_PAD)
    assert w_bf16.shape == (W_ROWS, HIDDEN_PAD)
    return vec_f32, w_bf16


def default_batch_tile():
    """Batch tile sized to the MXU height: 128 on v5e, 256 on v6e/v7x."""
    try:
        kind = jax.devices()[0].device_kind.lower()
    except Exception:  # pragma: no cover - fall back conservatively
        return 256
    return 128 if "v5" in kind else 256


def mlp_forward(x, vec_f32, w_bf16, out_dim, *, tm=None, out_dtype=jnp.float32):
    """x: [B, 1] f32. Returns [B, out_dim] in `out_dtype` (f32 by default to
    match the PyTorch module; pass bf16 to halve output-store HBM bytes at
    large batch — sigmoid output is in [0, 1])."""
    if tm is None:
        tm = default_batch_tile()
    B = x.shape[0]
    n_tiles = pl.cdiv(B, tm)
    b_pad = n_tiles * tm
    if b_pad != B:
        x = jnp.pad(x, ((0, b_pad - B), (0, 0)))

    out_bytes = b_pad * OUT_PAD * jnp.dtype(out_dtype).itemsize
    cost = pl.CostEstimate(
        flops=b_pad * (2 * HIDDEN_PAD + 4 * HIDDEN_PAD * HIDDEN_PAD),
        transcendentals=b_pad * OUT_PAD,
        bytes_accessed=b_pad * 4 + vec_f32.size * 4 + w_bf16.size * 2 + out_bytes,
    )

    y_pad = pl.pallas_call(
        mlp_kernel,
        out_shape=jax.ShapeDtypeStruct((b_pad, OUT_PAD), out_dtype),
        grid=(n_tiles,),
        in_specs=[
            # (TM, 1) input tile; last dim equals the full array dim so the
            # (8, 128) constraint is satisfied without widening x.
            pl.BlockSpec((tm, 1), lambda i: (i, 0)),
            # Constant index_map -> weight tiles DMA'd once, VMEM-resident
            # across every grid step.
            pl.BlockSpec((VEC_ROWS, HIDDEN_PAD), lambda i: (0, 0)),
            pl.BlockSpec((W_ROWS, HIDDEN_PAD), lambda i: (0, 0)),
        ],
        out_specs=pl.BlockSpec((tm, OUT_PAD), lambda i: (i, 0)),
        # Independent batch tiles: shards across v7x's 2 TensorCores; harmless
        # (no-op) on single-TC v5e/v6e.
        compiler_params=pltpu.CompilerParams(dimension_semantics=("parallel",)),
        cost_estimate=cost,
    )(x, vec_f32, w_bf16)
    # Padded lanes (10..127) hold sigmoid(0)=0.5 and padded batch rows are
    # garbage; both are dropped here — never consume y_pad directly.
    return y_pad[:B, :out_dim]


def init_params(key, in_dim, hidden, out_dim):
    """PyTorch nn.Linear default init (U[-k, k], k=1/sqrt(fan_in)); weights
    stored pre-transposed as [in, out]."""
    ks = jax.random.split(key, 6)

    def lin(kw, kb, fan_in, fan_out):
        bound = 1.0 / jnp.sqrt(float(fan_in))
        w = jax.random.uniform(kw, (fan_in, fan_out), jnp.float32, -bound, bound)
        b = jax.random.uniform(kb, (1, fan_out), jnp.float32, -bound, bound)
        return w, b

    w1, b1 = lin(ks[0], ks[1], in_dim, hidden)
    w2, b2 = lin(ks[2], ks[3], hidden, hidden)
    w3, b3 = lin(ks[4], ks[5], hidden, out_dim)
    return {"w1": w1, "b1": b1, "w2": w2, "b2": b2, "w3": w3, "b3": b3}


def reference_forward(x, p):
    h1 = jnp.maximum(x @ p["w1"] + p["b1"], 0.0)
    h2 = jnp.maximum(h1 @ p["w2"] + p["b2"], 0.0)
    return jax.nn.sigmoid(h2 @ p["w3"] + p["b3"])


if __name__ == "__main__":
    # Module defaults: input=1, hidden=20, out=10 (dropout_rate unused in forward).
    IN_DIM, HIDDEN, OUT_DIM = 1, 20, 10
    BATCH = 512  # two 256-row tiles (v6e/v7x) / four 128-row tiles (v5e) -> exercises the grid

    key = jax.random.PRNGKey(0)
    k_x, k_p = jax.random.split(key)

    x = jax.random.normal(k_x, (BATCH, IN_DIM), jnp.float32)
    params = init_params(k_p, IN_DIM, HIDDEN, OUT_DIM)
    vec_f32, w_bf16 = pack_params(params)  # done once; reused for every forward call

    y = mlp_forward(x, vec_f32, w_bf16, OUT_DIM)
    jax.block_until_ready(y)

    y_ref = reference_forward(x, params)
    assert y.shape == (BATCH, OUT_DIM)
    # bf16 MXU operands + approx (EUP) reciprocal vs exact f32 reference.
    err = float(jnp.max(jnp.abs(y.astype(jnp.float32) - y_ref)))
    assert err < 1e-2, err

    print("KERNEL_OK")
</pallas_src>

<mosaic_0001>
module attributes {stable_mosaic.version = 11 : i64} {
  func.func @mlp_kernel(%arg0: i32, %arg1: memref<256x1xf32, #tpu.memory_space<vmem>>, %arg2: memref<8x128xf32, #tpu.memory_space<vmem>>, %arg3: memref<256x128xbf16, #tpu.memory_space<vmem>>, %arg4: memref<256x128xf32, #tpu.memory_space<vmem>>) attributes {dimension_semantics = [#tpu.dimension_semantics<parallel>], iteration_bounds = array<i64: 2>, scalar_prefetch = 0 : i64, scratch_operands = 0 : i64, tpu.core_type = #tpu.core_type<tc>, window_params = [{transform_indices = @transform_0, window_bounds = array<i64: 256, 1>}, {pipeline_mode = #tpu.pipeline_mode<synchronous>, transform_indices = @transform_1, window_bounds = array<i64: 8, 128>}, {pipeline_mode = #tpu.pipeline_mode<synchronous>, transform_indices = @transform_2, window_bounds = array<i64: 256, 128>}, {transform_indices = @transform_3, window_bounds = array<i64: 256, 128>}]} {
    %c0 = arith.constant 0 : index
    %c0_0 = arith.constant 0 : index
    %0 = vector.load %arg1[%c0, %c0_0] : memref<256x1xf32, #tpu.memory_space<vmem>>, vector<256x1xf32>
    %c0_1 = arith.constant 0 : index
    %c0_2 = arith.constant 0 : index
    %1 = vector.load %arg2[%c0_1, %c0_2] : memref<8x128xf32, #tpu.memory_space<vmem>>, vector<8x128xf32>
    %2 = vector.extract_strided_slice %1 {offsets = [0, 0], sizes = [1, 128], strides = [1, 1]} : vector<8x128xf32> to vector<1x128xf32>
    %3 = vector.extract_strided_slice %1 {offsets = [1, 0], sizes = [1, 128], strides = [1, 1]} : vector<8x128xf32> to vector<1x128xf32>
    %4 = vector.extract_strided_slice %1 {offsets = [2, 0], sizes = [1, 128], strides = [1, 1]} : vector<8x128xf32> to vector<1x128xf32>
    %5 = vector.extract_strided_slice %1 {offsets = [3, 0], sizes = [1, 128], strides = [1, 1]} : vector<8x128xf32> to vector<1x128xf32>
    %c0_3 = arith.constant 0 : index
    %c0_4 = arith.constant 0 : index
    %6 = vector.load %arg3[%c0_3, %c0_4] : memref<256x128xbf16, #tpu.memory_space<vmem>>, vector<128x128xbf16>
    %c128 = arith.constant 128 : index
    %c0_5 = arith.constant 0 : index
    %7 = vector.load %arg3[%c128, %c0_5] : memref<256x128xbf16, #tpu.memory_space<vmem>>, vector<128x128xbf16>
    %8 = vector.broadcast %0 : vector<256x1xf32> to vector<256x128xf32>
    %9 = vector.broadcast %2 : vector<1x128xf32> to vector<256x128xf32>
    %10 = arith.mulf %8, %9 : vector<256x128xf32>
    %11 = vector.broadcast %3 : vector<1x128xf32> to vector<256x128xf32>
    %12 = arith.addf %10, %11 : vector<256x128xf32>
    %cst = arith.constant 0.000000e+00 : f32
    %13 = vector.broadcast %cst : f32 to vector<256x128xf32>
    %14 = arith.maximumf %12, %13 : vector<256x128xf32>
    %15 = arith.truncf %14 : vector<256x128xf32> to vector<256x128xbf16>
    %cst_6 = arith.constant dense<0.000000e+00> : vector<256x128xf32>
    %16 = tpu.matmul %15, %6, %cst_6 {dimension_numbers = #tpu.dot_dimension_numbers<[1], [0], [0], [1], [0, 0, 1, 1], [], []>} : vector<256x128xbf16>, vector<128x128xbf16>, vector<256x128xf32> -> vector<256x128xf32>
    %17 = vector.broadcast %4 : vector<1x128xf32> to vector<256x128xf32>
    %18 = arith.addf %16, %17 : vector<256x128xf32>
    %cst_7 = arith.constant 0.000000e+00 : f32
    %19 = vector.broadcast %cst_7 : f32 to vector<256x128xf32>
    %20 = arith.maximumf %18, %19 : vector<256x128xf32>
    %21 = arith.truncf %20 : vector<256x128xf32> to vector<256x128xbf16>
    %cst_8 = arith.constant dense<0.000000e+00> : vector<256x128xf32>
    %22 = tpu.matmul %21, %7, %cst_8 {dimension_numbers = #tpu.dot_dimension_numbers<[1], [0], [0], [1], [0, 0, 1, 1], [], []>} : vector<256x128xbf16>, vector<128x128xbf16>, vector<256x128xf32> -> vector<256x128xf32>
    %23 = vector.broadcast %5 : vector<1x128xf32> to vector<256x128xf32>
    %24 = arith.addf %22, %23 : vector<256x128xf32>
    %cst_9 = arith.constant 0.000000e+00 : f32
    %25 = vector.broadcast %cst_9 : f32 to vector<256x128xf32>
    %26 = arith.subf %25, %24 : vector<256x128xf32>
    %27 = math.exp %26 : vector<256x128xf32>
    %cst_10 = arith.constant 1.000000e+00 : f32
    %28 = vector.broadcast %cst_10 : f32 to vector<256x128xf32>
    %29 = arith.addf %28, %27 : vector<256x128xf32>
    %30 = tpu.reciprocal %29 {approx = true} : vector<256x128xf32> -> vector<256x128xf32>
    %c0_11 = arith.constant 0 : index
    %c0_12 = arith.constant 0 : index
    %31 = vector.load %arg4[%c0_11, %c0_12] : memref<256x128xf32, #tpu.memory_space<vmem>>, vector<256x128xf32>
    tpu.vector_store %arg4[%c0_11, %c0_12], %30 {strides = array<i32>} : memref<256x128xf32, #tpu.memory_space<vmem>>, vector<256x128xf32>,
    return
  }
  func.func @transform_0(%arg0: i32) -> (i32, i32) {
    %c0_i32 = arith.constant 0 : i32
    %c0_i32_0 = arith.constant 0 : i32
    return %arg0, %c0_i32 : i32, i32
  }
  func.func @transform_1(%arg0: i32) -> (i32, i32) {
    %c0_i32 = arith.constant 0 : i32
    %c0_i32_0 = arith.constant 0 : i32
    %c0_i32_1 = arith.constant 0 : i32
    return %c0_i32, %c0_i32_0 : i32, i32
  }
  func.func @transform_2(%arg0: i32) -> (i32, i32) {
    %c0_i32 = arith.constant 0 : i32
    %c0_i32_0 = arith.constant 0 : i32
    %c0_i32_1 = arith.constant 0 : i32
    return %c0_i32, %c0_i32_0 : i32, i32
  }
  func.func @transform_3(%arg0: i32) -> (i32, i32) {
    %c0_i32 = arith.constant 0 : i32
    %c0_i32_0 = arith.constant 0 : i32
    return %arg0, %c0_i32 : i32, i32
  }
}

</mosaic_0001>

<bundles_post_ra>
// kernel: tpu_custom_call.1
= control target key start
LH: loop header
LB: loop body
LE: loop exit
PB: predicated region body
PF: predicated region fallthrough
CT: control target
= control target key end

     0   :  { %8 = vsyncpa [#allocation3], 0  ;;  %s2080_s0 = inlined_call_operand.vmem [shape: f32[512,1], index: 0, kind: input, shape index: {}]   ;;  %s2081_s1 = inlined_call_operand.vmem [shape: f32[8,128], index: 1, kind: input, shape index: {}]   ;;  %s2082_s2 = inlined_call_operand.vmem [shape: bf16[256,128], index: 2, kind: input, shape index: {}]   ;;  %s2083_s3 = inlined_call_operand.hbm [shape: f32[512,128], index: 3, kind: output, shape index: {}]  }
   0x1   :  { %10 = vsyncpa [#allocation3 + $0x1], 0  ;;  %s1707_s12 = smov 0   ;;  %s1709_s13 = smov 0  }
   0x2   :  { %s1711_s14 = smov 0   ;;  %s1713_s15 = smov 0  }
   0x3 LB: > { %s1728_s16 = sadd.s32 4294967295, %s1681_s15   ;;  %s1260_s17 = sadd.s32 4294967294, %s1681_s15   ;;  %s1681_s15 = sphi %s1713_s15, %s2089_s15   ;;  %s1677_s14 = sphi %s1711_s14, %s2088_s14   ;;  %s1673_s13 = sphi %s1709_s13, %s2087_s13   ;;  %s1669_s12 = sphi %s1707_s12, %s2086_s12  }
   0x4   : > { %s1732_s18 = sadd.s32 1, %s1681_s15   ;;  %s91_s19 = sadd.s32 1, %s1677_s14 }
   0x5   : > { %s88_s20 = ssub.s32 %s1681_s15, %s1732_s18  ;;  %p101_p0 = scmp.ne.s32.totalorder %s1677_s14, %s1673_s13 }
   0x6   : > { %p89_p1 = scmp.eq.s32.totalorder %s88_s20, 0  ;;  %p102_p2 = scmp.eq.s32.totalorder %s1728_s16, 1 }
   0x7   : > { %p107_p3 = scmp.ne.s32.totalorder %s1673_s13, %s1669_s12  ;;  %p108_p4 = scmp.eq.s32.totalorder %s1260_s17, 1 }
   0x8   : > { %s1743_s21 = scalar_select %p89_p1, %s1677_s14, %s91_s19  }
   0x9   : > { %p1745_p5 = por %p102_p2, %p101_p0  ;;  %p1749_p6 = por %p108_p4, %p107_p3 }
   0xa   : > { %p1263_p7 = scmp.ge.s32.totalorder %s1681_s15, 1  ;;  %p141_p8 = scmp.lt.s32.totalorder %s1681_s15, 3 }
   0xc   : > { %p142_p9 = pnand %p1263_p7, %p141_p8 }
   0xd   : > { %s1265_s24 = sshll.u32 (!%p142_p9), %s1728_s16, 5  ;;  %s162_s27 = sand.u32 (!%p142_p9), 1, %s1673_s13  }
   0xe   : > { %145 = sbr.rel (%p142_p9) target bundleno = 673 (0x2a1), region = 32  ;;  %p166_p10 = scmp.lt.s32.totalorder (!%p142_p9), %s1265_s24, 63 }
   0xf   : > { %s1264_s28 = sshll.u32 (!%p142_p9), %s162_s27, 8  ;;  %s1288_s30 = sshll.u32 (!%p142_p9), %s1728_s16, 12 }
  0x10   : > { %s2032_s7 = scalar_lea.hbm (!%p142_p9), %s2083_s3, %s1288_s30  ;;  %s2040_s8 = scalar_lea.sflag (!%p142_p9), [#allocation3], %s162_s27 }
  0x11   : > { %s1684_s9 = smov (!%p142_p9), [#allocation2]  }
  0x12   : > { %s1625_s10 = sshll.u32 (!%p142_p9), %s1684_s9, 4  ;;  %s1626_s10 = int_to_ptr.vmem [resolvable:$false] %s1625_s10 }
  0x13   : > { %v1683_v0 = vmov 0   ;;  %v1477_v1 = vld [vmem:[%s2082_s2 + $0x38] sm:$0xff]   ;;  %v1478_v2 = vld [vmem:[%s2082_s2 + $0x30] sm:$0xff]   ;;  %s2091_s24 = smov (!%p166_p10, %s1265_s24), 63  ;;  %v1479_v3 = vld [vmem:[%s2082_s2 + $0x28] sm:$0xff]   ;;  %v398_v46 = vlaneseq  ;;  %s1627_s11 = scalar_lea.vmem %s1626_s10, 8192 }
  0x14   : > { %1476 = vset.pattern.permute.xlu1 %v1683_v0  ;;  %1475 = vset.pattern.permute.xlu0 %v1683_v0  ;;  %s1266_s29 = sshll.u32 %s2091_s24, 3  ;;  %v1480_v8 = vld [vmem:[%s2082_s2 + $0x20] sm:$0xff]   ;;  %v1481_v11 = vld [vmem:[%s2082_s2 + $0x18] sm:$0xff]   ;;  %v1482_v14 = vld [vmem:[%s2082_s2 + $0x10] sm:$0xff]  }
  0x15   : > { %1337 = vmatprep.subr.bf16.mxu0 %v1477_v1  ;;  %s1765_s5 = scalar_lea.vmem %s2080_s0, %s1266_s29  ;;  %v1483_v17 = vld [vmem:[%s2082_s2 + $0x8] sm:$0xff]   ;;  %v1484_v20 = vld [vmem:[%s2082_s2] sm:$0xff]   ;;  %v1485_v41 = vld [vmem:[%s2082_s2 + $0x78] sm:$0xff]   ;;  %v1832_v47 = vshrl.u32 %v398_v46, 7  ;;  %s1981_s29 = scalar_lea.vmem [#allocation2], %s1264_s28 }
  0x16   : > { %1338 = vmatpush3.bf16.msra.mxu0 %v1477_v1  ;;  %v175_v4 = vld [vmem:[%s1765_s5 + $0x10] sm:$0xff]  ;;  %v173_v5 = vld [vmem:[%s1765_s5] sm:$0xff]  ;;  %v176_v6 = vld [vmem:[%s1765_s5 + $0x18] sm:$0xff]  ;;  %1385 = vmatprep.subr.bf16.mxu1 %v1485_v41  ;;  %s1198_s4 = sshll.u32 %s1981_s29, 4  ;;  %s2034_s4 = int_to_ptr.vmem [resolvable:$true] %s1198_s4 }
  0x17   : > { %1339 = vmatprep.subr.bf16.mxu0 %v1478_v2  ;;  %250 = vperm.xlu1 %1476, %v175_v4   ;;  %v174_v7 = vld [vmem:[%s1765_s5 + $0x8] sm:$0xff]  ;;  %v177_v10 = vld [vmem:[%s1765_s5 + $0x20] sm:$0xff]  ;;  %v180_v12 = vld [vmem:[%s1765_s5 + $0x38] sm:$0xff]  ;;  %v400_v48 = vsub.s32 0, %v1832_v47  ;;  %v436_v50 = vsub.s32 1, %v1832_v47  ;;  %s1621_s16 = scalar_lea.vmem %s2034_s4, 4096  ;;  %p1628_p0 = scmp.lt.s32.totalorder %s2034_s4, %s1626_s10 }
  0x18   : > { %240 = vperm.xlu0 %1475, %v173_v5   ;;  %v178_v9 = vld [vmem:[%s1765_s5 + $0x28] sm:$0xff]  ;;  %v179_v13 = vld [vmem:[%s1765_s5 + $0x30] sm:$0xff]  ;;  %v181_v16 = vld [vmem:[%s1765_s5 + $0x40] sm:$0xff]  ;;  %1386 = vmatpush3.bf16.msra.mxu1 %v1485_v41  ;;  %p1622_p11 = scmp.ne.s32.totalorder %s2034_s4, %s1621_s16  ;;  %p1629_p1 = scmp.lt.s32.totalorder %s1627_s11, %s1621_s16 }
  0x19   : > { %v182_v15 = vld [vmem:[%s1765_s5 + $0x48] sm:$0xff]  ;;  %v184_v18 = vld [vmem:[%s1765_s5 + $0x58] sm:$0xff]  ;;  %v183_v19 = vld [vmem:[%s1765_s5 + $0x50] sm:$0xff] }
  0x1a   : > { %1340 = vmatpush3.bf16.msra.mxu0 %v1478_v2  ;;  %v186_v21 = vld [vmem:[%s1765_s5 + $0x68] sm:$0xff]  ;;  %v185_v22 = vld [vmem:[%s1765_s5 + $0x60] sm:$0xff]  ;;  %v188_v23 = vld [vmem:[%s1765_s5 + $0x78] sm:$0xff]  ;;  %p1623_p12 = pnand %p1622_p11, %p1745_p5  ;;  %p1630_p2 = por %p1629_p1, %p1628_p0 }
  0x1b   : > { %1341 = vmatprep.subr.bf16.mxu0 %v1479_v3  ;;  %255 = vperm.xlu1 %1476, %v176_v6   ;;  %v187_v24 = vld [vmem:[%s1765_s5 + $0x70] sm:$0xff]  ;;  %v190_v25 = vld [vmem:[%s1765_s5 + $0x88] sm:$0xff]  ;;  %v189_v26 = vld [vmem:[%s1765_s5 + $0x80] sm:$0xff] }
  0x1c   : > { %245 = vperm.xlu0 %1475, %v174_v7   ;;  %v192_v27 = vld [vmem:[%s1765_s5 + $0x98] sm:$0xff]  ;;  %v191_v28 = vld [vmem:[%s1765_s5 + $0x90] sm:$0xff]  ;;  %v194_v29 = vld [vmem:[%s1765_s5 + $0xa8] sm:$0xff]  ;;  %p1624_p13 = pneg %p1623_p12 }
  0x1d   : > { %v193_v30 = vld [vmem:[%s1765_s5 + $0xa0] sm:$0xff]  ;;  %v196_v31 = vld [vmem:[%s1765_s5 + $0xb8] sm:$0xff]  ;;  %v195_v32 = vld [vmem:[%s1765_s5 + $0xb0] sm:$0xff] }
  0x1e   : > { %1342 = vmatpush3.bf16.msra.mxu0 %v1479_v3  ;;  %v198_v33 = vld [vmem:[%s1765_s5 + $0xc8] sm:$0xff]  ;;  %v197_v34 = vld [vmem:[%s1765_s5 + $0xc0] sm:$0xff]  ;;  %v200_v35 = vld [vmem:[%s1765_s5 + $0xd8] sm:$0xff]  ;;  %p1631_p3 = pnand %p1630_p2, %p1624_p13 }
  0x1f   : > { %1343 = vmatprep.subr.bf16.mxu0 %v1480_v8  ;;  %265 = vperm.xlu1 %1476, %v178_v9   ;;  %v199_v36 = vld [vmem:[%s1765_s5 + $0xd0] sm:$0xff]  ;;  %v202_v37 = vld [vmem:[%s1765_s5 + $0xe8] sm:$0xff]  ;;  %v201_v38 = vld [vmem:[%s1765_s5 + $0xe0] sm:$0xff] }
  0x20   : > { %260 = vperm.xlu0 %1475, %v177_v10   ;;  %v204_v39 = vld [vmem:[%s1765_s5 + $0xf8] sm:$0xff]  ;;  %v203_v40 = vld [vmem:[%s1765_s5 + $0xf0] sm:$0xff]  ;;  %v1487_v43 = vld [vmem:[%s2082_s2 + $0x68] sm:$0xff]  }
  0x21   : > { %v1486_v42 = vld [vmem:[%s2082_s2 + $0x70] sm:$0xff]   ;;  %v1488_v44 = vld [vmem:[%s2082_s2 + $0x60] sm:$0xff]   ;;  %v1489_v45 = vld [vmem:[%s2082_s2 + $0x58] sm:$0xff]  }
  0x22   : > { %1344 = vmatpush3.bf16.msra.mxu0 %v1480_v8  ;;  %1387 = vmatprep.subr.bf16.mxu1 %v1486_v42  ;;  %v1838_v49 = vld [vmem:[%s2081_s1] sm:$0xff] }
  0x23   : > { %1345 = vmatprep.subr.bf16.mxu0 %v1481_v11  ;;  %275 = vperm.xlu1 %1476, %v180_v12   ;;  %v1842_v51 = vrot.slane %v1838_v49, %v400_v48  ;;  %v1845_v52 = vrot.slane %v1838_v49, %v436_v50 }
  0x24   : > { %270 = vperm.xlu0 %1475, %v179_v13   ;;  %1388 = vmatpush3.bf16.msra.mxu1 %v1486_v42 }
  0x25   : > { %1389 = vmatprep.subr.bf16.mxu1 %v1487_v43 }
  0x26   : > { %1346 = vmatpush3.bf16.msra.mxu0 %v1481_v11 }
  0x27   : > { %1347 = vmatprep.subr.bf16.mxu0 %v1482_v14  ;;  %285 = vperm.xlu1 %1476, %v182_v15  }
  0x28   : > { %280 = vperm.xlu0 %1475, %v181_v16   ;;  %1390 = vmatpush3.bf16.msra.mxu1 %v1487_v43 }
  0x29   : > { %1391 = vmatprep.subr.bf16.mxu1 %v1488_v44 }
  0x2a   : > { %1348 = vmatpush3.bf16.msra.mxu0 %v1482_v14 }
  0x2b   : > { %1349 = vmatprep.subr.bf16.mxu0 %v1483_v17  ;;  %295 = vperm.xlu1 %1476, %v184_v18  }
  0x2c   : > { %290 = vperm.xlu0 %1475, %v183_v19   ;;  %1392 = vmatpush3.bf16.msra.mxu1 %v1488_v44 }
  0x2d   : > { %1393 = vmatprep.subr.bf16.mxu1 %v1489_v45 }
  0x2e   : > { %1350 = vmatpush3.bf16.msra.mxu0 %v1483_v17 }
  0x2f   : > { %1351 = vmatprep.subr.bf16.mxu0 %v1484_v20  ;;  %305 = vperm.xlu1 %1476, %v186_v21  }
  0x30   : > { %300 = vperm.xlu0 %1475, %v185_v22   ;;  %1394 = vmatpush3.bf16.msra.mxu1 %v1489_v45 }
  0x32   : > { %1352 = vmatpush3.bf16.msra.mxu0 %v1484_v20 }
  0x33   : > { %315 = vperm.xlu1 %1476, %v188_v23  }
  0x34   : > { %310 = vperm.xlu0 %1475, %v187_v24  }
  0x37   : > { %325 = vperm.xlu1 %1476, %v190_v25  }
  0x38   : > { %320 = vperm.xlu0 %1475, %v189_v26  }
  0x3b   : > { %335 = vperm.xlu1 %1476, %v192_v27  }
  0x3c   : > { %330 = vperm.xlu0 %1475, %v191_v28  }
  0x3f   : > { %345 = vperm.xlu1 %1476, %v194_v29  }
  0x40   : > { %340 = vperm.xlu0 %1475, %v193_v30  }
  0x43   : > { %355 = vperm.xlu1 %1476, %v196_v31  }
  0x44   : > { %350 = vperm.xlu0 %1475, %v195_v32  }
  0x47   : > { %365 = vperm.xlu1 %1476, %v198_v33  }
  0x48   : > { %360 = vperm.xlu0 %1475, %v197_v34  }
  0x4b   : > { %375 = vperm.xlu1 %1476, %v200_v35  }
  0x4c   : > { %370 = vperm.xlu0 %1475, %v199_v36  }
  0x4f   : > { %385 = vperm.xlu1 %1476, %v202_v37  }
  0x50   : > { %380 = vperm.xlu0 %1475, %v201_v38  }
  0x53   : > { %395 = vperm.xlu1 %1476, %v204_v39  }
  0x54   : > { %390 = vperm.xlu0 %1475, %v203_v40  }
  0x92   : > { %v251_v53 = vpop.permute.xlu1 %250 }
  0x93   : > { %v241_v54 = vpop.permute.xlu0 %240  ;;  %v404_v55 = vmul.f32 %v1842_v51, %v251_v53 }
  0x94   : > { %v402_v56 = vmul.f32 %v1842_v51, %v241_v54 }
  0x95   : > { %v440_v57 = vadd.f32 %v1845_v52, %v404_v55 }
  0x96   : > { %v256_v58 = vpop.permute.xlu1 %255  ;;  %v438_v60 = vadd.f32 %v1845_v52, %v402_v56 }
  0x97   : > { %v246_v59 = vpop.permute.xlu0 %245  ;;  %v405_v61 = vmul.f32 %v1842_v51, %v256_v58  ;;  %v472_v1 = vmax.f32 %v440_v57, 0.0 }
  0x98   : > { %v403_v62 = vmul.f32 %v1842_v51, %v246_v59  ;;  %v470_v4 = vmax.f32 %v438_v60, 0.0 }
  0x99   : > { %v441_v63 = vadd.f32 %v1845_v52, %v405_v61 }
  0x9a   : > { %v439_v0 = vadd.f32 %v1845_v52, %v403_v62  ;;  %v266_v2 = vpop.permute.xlu1 %265 }
  0x9b   : > { %v261_v3 = vpop.permute.xlu0 %260  ;;  %v473_v5 = vmax.f32 %v441_v63, 0.0  ;;  %v407_v6 = vmul.f32 %v1842_v51, %v266_v2 }
  0x9c   : > { %v406_v7 = vmul.f32 %v1842_v51, %v261_v3  ;;  %v471_v8 = vmax.f32 %v439_v0, 0.0 }
  0x9d   : > { %v443_v9 = vadd.f32 %v1845_v52, %v407_v6  ;;  %v503_v12 = vpack.c.bf16 %v473_v5, %v472_v1 }
  0x9e   : > { %v442_v10 = vadd.f32 %v1845_v52, %v406_v7  ;;  %v502_v11 = vpack.c.bf16 %v471_v8, %v470_v4  ;;  %v276_v13 = vpop.permute.xlu1 %275 }
  0x9f   : > { %v271_v14 = vpop.permute.xlu0 %270  ;;  %v475_v15 = vmax.f32 %v443_v9, 0.0  ;;  %v409_v17 = vmul.f32 %v1842_v51, %v276_v13 }
  0xa0   : > { %v474_v16 = vmax.f32 %v442_v10, 0.0  ;;  %v408_v18 = vmul.f32 %v1842_v51, %v271_v14  ;;  %1353 = vmatprep.mubr.bf16.mxu0 %v502_v11 }
  0xa1   : > { %1354 = vmatmul.mubr.bf16.vlgmr.msra.gmra.mxu0 %v503_v12  ;;  %v445_v19 = vadd.f32 %v1845_v52, %v409_v17 }
  0xa2   : > { %v444_v20 = vadd.f32 %v1845_v52, %v408_v18  ;;  %v504_v21 = vpack.c.bf16 %v475_v15, %v474_v16  ;;  %v286_v22 = vpop.permute.xlu1 %285 }
  0xa3   : > { %v281_v23 = vpop.permute.xlu0 %280  ;;  %v477_v24 = vmax.f32 %v445_v19, 0.0  ;;  %v411_v26 = vmul.f32 %v1842_v51, %v286_v22 }
  0xa4   : > { %v476_v25 = vmax.f32 %v444_v20, 0.0  ;;  %v410_v27 = vmul.f32 %v1842_v51, %v281_v23  ;;  %1357 = vmatprep.mubr.bf16.mxu0 %v504_v21 }
  0xa5   : > { %v447_v28 = vadd.f32 %v1845_v52, %v411_v26 }
  0xa6   : > { %v446_v29 = vadd.f32 %v1845_v52, %v410_v27  ;;  %v505_v30 = vpack.c.bf16 %v477_v24, %v476_v25  ;;  %v296_v31 = vpop.permute.xlu1 %295 }
  0xa7   : > { %v291_v32 = vpop.permute.xlu0 %290  ;;  %v479_v33 = vmax.f32 %v447_v28, 0.0  ;;  %v413_v35 = vmul.f32 %v1842_v51, %v296_v31 }
  0xa8   : > { %v478_v34 = vmax.f32 %v446_v29, 0.0  ;;  %v412_v36 = vmul.f32 %v1842_v51, %v291_v32 }
  0xa9   : > { %1358 = vmatmul.mubr.bf16.gmra.mxu0 %v505_v30  ;;  %v449_v37 = vadd.f32 %v1845_v52, %v413_v35 }
  0xaa   : > { %v448_v38 = vadd.f32 %v1845_v52, %v412_v36  ;;  %v506_v39 = vpack.c.bf16 %v479_v33, %v478_v34  ;;  %v306_v40 = vpop.permute.xlu1 %305 }
  0xab   : > { %v301_v41 = vpop.permute.xlu0 %300  ;;  %v481_v42 = vmax.f32 %v449_v37, 0.0  ;;  %v415_v44 = vmul.f32 %v1842_v51, %v306_v40 }
  0xac   : > { %v480_v43 = vmax.f32 %v448_v38, 0.0  ;;  %v414_v45 = vmul.f32 %v1842_v51, %v301_v41  ;;  %1361 = vmatprep.mubr.bf16.mxu0 %v506_v39 }
  0xad   : > { %v451_v46 = vadd.f32 %v1845_v52, %v415_v44 }
  0xae   : > { %v450_v48 = vadd.f32 %v1845_v52, %v414_v45  ;;  %v507_v50 = vpack.c.bf16 %v481_v42, %v480_v43  ;;  %v316_v53 = vpop.permute.xlu1 %315 }
  0xaf   : > { %v311_v54 = vpop.permute.xlu0 %310  ;;  %v483_v55 = vmax.f32 %v451_v46, 0.0  ;;  %v417_v57 = vmul.f32 %v1842_v51, %v316_v53 }
  0xb0   : > { %v482_v56 = vmax.f32 %v450_v48, 0.0  ;;  %v416_v58 = vmul.f32 %v1842_v51, %v311_v54 }
  0xb1   : > { %1362 = vmatmul.mubr.bf16.gmra.mxu0 %v507_v50  ;;  %v453_v59 = vadd.f32 %v1845_v52, %v417_v57 }
  0xb2   : > { %v452_v60 = vadd.f32 %v1845_v52, %v416_v58  ;;  %v508_v61 = vpack.c.bf16 %v483_v55, %v482_v56  ;;  %v326_v62 = vpop.permute.xlu1 %325 }
  0xb3   : > { %v321_v63 = vpop.permute.xlu0 %320  ;;  %v485_v0 = vmax.f32 %v453_v59, 0.0  ;;  %v419_v2 = vmul.f32 %v1842_v51, %v326_v62 }
  0xb4   : > { %v484_v1 = vmax.f32 %v452_v60, 0.0  ;;  %v418_v3 = vmul.f32 %v1842_v51, %v321_v63  ;;  %1365 = vmatprep.mubr.bf16.mxu0 %v508_v61 }
  0xb5   : > { %v455_v4 = vadd.f32 %v1845_v52, %v419_v2 }
  0xb6   : > { %v454_v5 = vadd.f32 %v1845_v52, %v418_v3  ;;  %v509_v6 = vpack.c.bf16 %v485_v0, %v484_v1  ;;  %v336_v7 = vpop.permute.xlu1 %335 }
  0xb7   : > { %v331_v8 = vpop.permute.xlu0 %330  ;;  %v487_v9 = vmax.f32 %v455_v4, 0.0  ;;  %v421_v11 = vmul.f32 %v1842_v51, %v336_v7 }
  0xb8   : > { %v486_v10 = vmax.f32 %v454_v5, 0.0  ;;  %v420_v12 = vmul.f32 %v1842_v51, %v331_v8 }
  0xb9   : > { %1366 = vmatmul.mubr.bf16.gmra.mxu0 %v509_v6  ;;  %v457_v13 = vadd.f32 %v1845_v52, %v421_v11 }
  0xba   : > { %v456_v14 = vadd.f32 %v1845_v52, %v420_v12  ;;  %v510_v15 = vpack.c.bf16 %v487_v9, %v486_v10  ;;  %v346_v16 = vpop.permute.xlu1 %345 }
  0xbb   : > { %v341_v17 = vpop.permute.xlu0 %340  ;;  %v489_v18 = vmax.f32 %v457_v13, 0.0  ;;  %v423_v20 = vmul.f32 %v1842_v51, %v346_v16  ;;  %v1490_v13 = vld [vmem:[%s2082_s2 + $0x50] sm:$0xff]  }
  0xbc   : > { %v488_v19 = vmax.f32 %v456_v14, 0.0  ;;  %v422_v21 = vmul.f32 %v1842_v51, %v341_v17  ;;  %1369 = vmatprep.mubr.bf16.mxu0 %v510_v15  ;;  %1395 = vmatprep.subr.bf16.mxu1 %v1490_v13  ;;  %v520_v14 = vsub.s32 2, %v1832_v47 }
  0xbd   : > { %v459_v22 = vadd.f32 %v1845_v52, %v423_v20  ;;  %1396 = vmatpush3.bf16.msra.mxu1 %v1490_v13 }
  0xbe   : > { %v458_v23 = vadd.f32 %v1845_v52, %v422_v21  ;;  %v511_v24 = vpack.c.bf16 %v489_v18, %v488_v19  ;;  %v356_v25 = vpop.permute.xlu1 %355  ;;  %v1922_v16 = vrot.slane %v1838_v49, %v520_v14 }
  0xbf   : > { %v351_v26 = vpop.permute.xlu0 %350  ;;  %v491_v27 = vmax.f32 %v459_v22, 0.0  ;;  %v425_v29 = vmul.f32 %v1842_v51, %v356_v25 }
  0xc0   : > { %v490_v28 = vmax.f32 %v458_v23, 0.0  ;;  %v424_v30 = vmul.f32 %v1842_v51, %v351_v26 }
  0xc1   : > { %1370 = vmatmul.mubr.bf16.gmra.mxu0 %v511_v24  ;;  %v461_v31 = vadd.f32 %v1845_v52, %v425_v29 }
  0xc2   : > { %v460_v32 = vadd.f32 %v1845_v52, %v424_v30  ;;  %v512_v33 = vpack.c.bf16 %v491_v27, %v490_v28  ;;  %v366_v34 = vpop.permute.xlu1 %365 }
  0xc3   : > { %v361_v35 = vpop.permute.xlu0 %360  ;;  %v493_v36 = vmax.f32 %v461_v31, 0.0  ;;  %v427_v38 = vmul.f32 %v1842_v51, %v366_v34 }
  0xc4   : > { %v492_v37 = vmax.f32 %v460_v32, 0.0  ;;  %v426_v39 = vmul.f32 %v1842_v51, %v361_v35  ;;  %1373 = vmatprep.mubr.bf16.mxu0 %v512_v33 }
  0xc5   : > { %v463_v40 = vadd.f32 %v1845_v52, %v427_v38 }
  0xc6   : > { %v462_v41 = vadd.f32 %v1845_v52, %v426_v39  ;;  %v513_v42 = vpack.c.bf16 %v493_v36, %v492_v37  ;;  %v376_v43 = vpop.permute.xlu1 %375 }
  0xc7   : > { %v371_v44 = vpop.permute.xlu0 %370  ;;  %v495_v45 = vmax.f32 %v463_v40, 0.0  ;;  %v429_v48 = vmul.f32 %v1842_v51, %v376_v43 }
  0xc8   : > { %v494_v46 = vmax.f32 %v462_v41, 0.0  ;;  %v428_v50 = vmul.f32 %v1842_v51, %v371_v44 }
  0xc9   : > { %1374 = vmatmul.mubr.bf16.gmra.mxu0 %v513_v42  ;;  %v465_v53 = vadd.f32 %v1845_v52, %v429_v48 }
  0xca   : > { %v464_v54 = vadd.f32 %v1845_v52, %v428_v50  ;;  %v514_v55 = vpack.c.bf16 %v495_v45, %v494_v46  ;;  %v386_v56 = vpop.permute.xlu1 %385 }
  0xcb   : > { %v381_v57 = vpop.permute.xlu0 %380  ;;  %v497_v58 = vmax.f32 %v465_v53, 0.0  ;;  %v431_v60 = vmul.f32 %v1842_v51, %v386_v56 }
  0xcc   : > { %v496_v59 = vmax.f32 %v464_v54, 0.0  ;;  %v430_v61 = vmul.f32 %v1842_v51, %v381_v57  ;;  %1377 = vmatprep.mubr.bf16.mxu0 %v514_v55 }
  0xcd   : > { %v467_v62 = vadd.f32 %v1845_v52, %v431_v60 }
  0xce   : > { %v466_v63 = vadd.f32 %v1845_v52, %v430_v61  ;;  %v515_v0 = vpack.c.bf16 %v497_v58, %v496_v59  ;;  %v396_v1 = vpop.permute.xlu1 %395 }
  0xcf   : > { %v391_v2 = vpop.permute.xlu0 %390  ;;  %v499_v3 = vmax.f32 %v467_v62, 0.0  ;;  %v433_v5 = vmul.f32 %v1842_v51, %v396_v1 }
  0xd0   : > { %v498_v4 = vmax.f32 %v466_v63, 0.0  ;;  %v432_v6 = vmul.f32 %v1842_v51, %v391_v2  ;;  %v1491_v51 = vld [vmem:[%s2082_s2 + $0x48] sm:$0xff]  }
  0xd1   : > { %1378 = vmatmul.mubr.bf16.gmra.mxu0 %v515_v0  ;;  %v469_v7 = vadd.f32 %v1845_v52, %v433_v5  ;;  %1397 = vmatprep.subr.bf16.mxu1 %v1491_v51 }
  0xd2   : > { %v468_v8 = vadd.f32 %v1845_v52, %v432_v6  ;;  %v516_v9 = vpack.c.bf16 %v499_v3, %v498_v4  ;;  %1398 = vmatpush3.bf16.msra.mxu1 %v1491_v51  ;;  %v1492_v52 = vld [vmem:[%s2082_s2 + $0x40] sm:$0xff]  }
  0xd3   : > { %v501_v10 = vmax.f32 %v469_v7, 0.0  ;;  %1399 = vmatprep.subr.bf16.mxu1 %v1492_v52 }
  0xd4   : > { %v500_v11 = vmax.f32 %v468_v8, 0.0  ;;  %1381 = vmatprep.mubr.bf16.mxu0 %v516_v9 }
  0xd6   : > { %v517_v12 = vpack.c.bf16 %v501_v10, %v500_v11  ;;  %1400 = vmatpush3.bf16.msra.mxu1 %v1492_v52 }
  0xd9   : > { %1382 = vmatmul.mubr.bf16.gmra.mxu0 %v517_v12 }
 0x161   : > { %v1355_v15 = vpop.f32.mrf.mxu0 }
 0x162   : > { %v613_v21 = vadd.f32 %v1355_v15, %v1922_v16 }
 0x163   : > { %v604_v17 = vpop.f32.mrf.mxu0 }
 0x164   : > { %v605_v19 = vadd.f32 %v604_v17, %v1922_v16  ;;  %v733_v28 = vmax.f32 %v613_v21, 0.0 }
 0x165   : > { %v1356_v18 = vpop.f32.mrf.mxu0 }
 0x166   : > { %v616_v20 = vadd.f32 %v1356_v18, %v1922_v16  ;;  %v731_v26 = vmax.f32 %v605_v19, 0.0 }
 0x167   : > { %v607_v22 = vpop.f32.mrf.mxu0 }
 0x168   : > { %v608_v23 = vadd.f32 %v607_v22, %v1922_v16  ;;  %v734_v24 = vmax.f32 %v616_v20, 0.0 }
 0x169   : > { %v1359_v25 = vpop.f32.mrf.mxu0 }
 0x16a   : > { %v732_v27 = vmax.f32 %v608_v23, 0.0  ;;  %v764_v31 = vpack.c.bf16 %v734_v24, %v733_v28  ;;  %v629_v35 = vadd.f32 %v1359_v25, %v1922_v16 }
 0x16b   : > { %v620_v29 = vpop.f32.mrf.mxu0 }
 0x16c   : > { %v763_v30 = vpack.c.bf16 %v732_v27, %v731_v26  ;;  %v621_v33 = vadd.f32 %v620_v29, %v1922_v16  ;;  %v737_v42 = vmax.f32 %v629_v35, 0.0 }
 0x16d   : > { %v1360_v32 = vpop.f32.mrf.mxu0 }
 0x16e   : > { %v632_v34 = vadd.f32 %v1360_v32, %v1922_v16  ;;  %1401 = vmatprep.mubr.bf16.mxu1 %v763_v30  ;;  %v735_v40 = vmax.f32 %v621_v33, 0.0 }
 0x16f   : > { %v623_v36 = vpop.f32.mrf.mxu0  ;;  %1402 = vmatmul.mubr.bf16.vlgmr.msra.gmra.mxu1 %v764_v31 }
 0x170   : > { %v624_v37 = vadd.f32 %v623_v36, %v1922_v16  ;;  %v738_v38 = vmax.f32 %v632_v34, 0.0 }
 0x171   : > { %v1363_v39 = vpop.f32.mrf.mxu0 }
 0x172   : > { %v736_v41 = vmax.f32 %v624_v37, 0.0  ;;  %v766_v45 = vpack.c.bf16 %v738_v38, %v737_v42  ;;  %v645_v53 = vadd.f32 %v1363_v39, %v1922_v16 }
 0x173   : > { %v636_v43 = vpop.f32.mrf.mxu0 }
 0x174   : > { %v765_v44 = vpack.c.bf16 %v736_v41, %v735_v40  ;;  %v637_v48 = vadd.f32 %v636_v43, %v1922_v16  ;;  %v741_v60 = vmax.f32 %v645_v53, 0.0 }
 0x175   : > { %v1364_v46 = vpop.f32.mrf.mxu0 }
 0x176   : > { %v648_v50 = vadd.f32 %v1364_v46, %v1922_v16  ;;  %1405 = vmatprep.mubr.bf16.mxu1 %v765_v44  ;;  %v739_v58 = vmax.f32 %v637_v48, 0.0 }
 0x177   : > { %v639_v54 = vpop.f32.mrf.mxu0  ;;  %1406 = vmatmul.mubr.bf16.gmra.mxu1 %v766_v45 }
 0x178   : > { %v640_v55 = vadd.f32 %v639_v54, %v1922_v16  ;;  %v742_v56 = vmax.f32 %v648_v50, 0.0 }
 0x179   : > { %v1367_v57 = vpop.f32.mrf.mxu0 }
 0x17a   : > { %v740_v59 = vmax.f32 %v640_v55, 0.0  ;;  %v768_v63 = vpack.c.bf16 %v742_v56, %v741_v60  ;;  %v661_v3 = vadd.f32 %v1367_v57, %v1922_v16 }
 0x17b   : > { %v652_v61 = vpop.f32.mrf.mxu0 }
 0x17c   : > { %v767_v62 = vpack.c.bf16 %v740_v59, %v739_v58  ;;  %v653_v1 = vadd.f32 %v652_v61, %v1922_v16  ;;  %v745_v10 = vmax.f32 %v661_v3, 0.0 }
 0x17d   : > { %v1368_v0 = vpop.f32.mrf.mxu0 }
 0x17e   : > { %v664_v2 = vadd.f32 %v1368_v0, %v1922_v16  ;;  %1409 = vmatprep.mubr.bf16.mxu1 %v767_v62  ;;  %v743_v8 = vmax.f32 %v653_v1, 0.0 }
 0x17f   : > { %v655_v4 = vpop.f32.mrf.mxu0  ;;  %1410 = vmatmul.mubr.bf16.gmra.mxu1 %v768_v63 }
 0x180   : > { %v656_v5 = vadd.f32 %v655_v4, %v1922_v16  ;;  %v746_v6 = vmax.f32 %v664_v2, 0.0 }
 0x181   : > { %v1371_v7 = vpop.f32.mrf.mxu0 }
 0x182   : > { %v744_v9 = vmax.f32 %v656_v5, 0.0  ;;  %v770_v13 = vpack.c.bf16 %v746_v6, %v745_v10  ;;  %v677_v15 = vadd.f32 %v1371_v7, %v1922_v16  ;;  %v781_v7 = vsub.s32 3, %v1832_v47 }
 0x183   : > { %v668_v11 = vpop.f32.mrf.mxu0 }
 0x184   : > { %v769_v12 = vpack.c.bf16 %v744_v9, %v743_v8  ;;  %v669_v52 = vadd.f32 %v668_v11, %v1922_v16  ;;  %v749_v23 = vmax.f32 %v677_v15, 0.0  ;;  %v1958_v8 = vrot.slane %v1838_v49, %v781_v7 }
 0x185   : > { %v1372_v51 = vpop.f32.mrf.mxu0 }
 0x186   : > { %v680_v14 = vadd.f32 %v1372_v51, %v1922_v16  ;;  %1413 = vmatprep.mubr.bf16.mxu1 %v769_v12  ;;  %v747_v21 = vmax.f32 %v669_v52, 0.0 }
 0x187   : > { %v671_v17 = vpop.f32.mrf.mxu0  ;;  %1414 = vmatmul.mubr.bf16.gmra.mxu1 %v770_v13 }
 0x188   : > { %v672_v18 = vadd.f32 %v671_v17, %v1922_v16  ;;  %v750_v19 = vmax.f32 %v680_v14, 0.0 }
 0x189   : > { %v1375_v20 = vpop.f32.mrf.mxu0 }
 0x18a   : > { %v748_v22 = vmax.f32 %v672_v18, 0.0  ;;  %v772_v26 = vpack.c.bf16 %v750_v19, %v749_v23  ;;  %v693_v30 = vadd.f32 %v1375_v20, %v1922_v16 }
 0x18b   : > { %v684_v24 = vpop.f32.mrf.mxu0 }
 0x18c   : > { %v771_v25 = vpack.c.bf16 %v748_v22, %v747_v21  ;;  %v685_v28 = vadd.f32 %v684_v24, %v1922_v16  ;;  %v753_v37 = vmax.f32 %v693_v30, 0.0 }
 0x18d   : > { %v1376_v27 = vpop.f32.mrf.mxu0 }
 0x18e   : > { %v696_v29 = vadd.f32 %v1376_v27, %v1922_v16  ;;  %1417 = vmatprep.mubr.bf16.mxu1 %v771_v25  ;;  %v751_v35 = vmax.f32 %v685_v28, 0.0 }
 0x18f   : > { %v687_v31 = vpop.f32.mrf.mxu0  ;;  %1418 = vmatmul.mubr.bf16.gmra.mxu1 %v772_v26 }
 0x190   : > { %v688_v32 = vadd.f32 %v687_v31, %v1922_v16  ;;  %v754_v33 = vmax.f32 %v696_v29, 0.0 }
 0x191   : > { %v1379_v34 = vpop.f32.mrf.mxu0 }
 0x192   : > { %v752_v36 = vmax.f32 %v688_v32, 0.0  ;;  %v774_v40 = vpack.c.bf16 %v754_v33, %v753_v37  ;;  %v709_v44 = vadd.f32 %v1379_v34, %v1922_v16 }
 0x193   : > { %v700_v38 = vpop.f32.mrf.mxu0 }
 0x194   : > { %v773_v39 = vpack.c.bf16 %v752_v36, %v751_v35  ;;  %v701_v42 = vadd.f32 %v700_v38, %v1922_v16  ;;  %v757_v55 = vmax.f32 %v709_v44, 0.0 }
 0x195   : > { %v1380_v41 = vpop.f32.mrf.mxu0 }
 0x196   : > { %v712_v43 = vadd.f32 %v1380_v41, %v1922_v16  ;;  %1421 = vmatprep.mubr.bf16.mxu1 %v773_v39  ;;  %v755_v53 = vmax.f32 %v701_v42, 0.0 }
 0x197   : > { %v703_v45 = vpop.f32.mrf.mxu0  ;;  %1422 = vmatmul.mubr.bf16.gmra.mxu1 %v774_v40 }
 0x198   : > { %v704_v46 = vadd.f32 %v703_v45, %v1922_v16  ;;  %v758_v48 = vmax.f32 %v712_v43, 0.0 }
 0x199   : > { %v1383_v50 = vpop.f32.mrf.mxu0 }
 0x19a   : > { %v756_v54 = vmax.f32 %v704_v46, 0.0  ;;  %v776_v58 = vpack.c.bf16 %v758_v48, %v757_v55  ;;  %v725_v62 = vadd.f32 %v1383_v50, %v1922_v16 }
 0x19b   : > { %v716_v56 = vpop.f32.mrf.mxu0 }
 0x19c   : > { %v775_v57 = vpack.c.bf16 %v756_v54, %v755_v53  ;;  %v717_v60 = vadd.f32 %v716_v56, %v1922_v16  ;;  %v761_v4 = vmax.f32 %v725_v62, 0.0 }
 0x19d   : > { %v1384_v59 = vpop.f32.mrf.mxu0 }
 0x19e   : > { %v728_v61 = vadd.f32 %v1384_v59, %v1922_v16  ;;  %1425 = vmatprep.mubr.bf16.mxu1 %v775_v57  ;;  %v759_v2 = vmax.f32 %v717_v60, 0.0 }
 0x19f   : > { %v719_v63 = vpop.f32.mrf.mxu0  ;;  %1426 = vmatmul.mubr.bf16.gmra.mxu1 %v776_v58 }
 0x1a0   : > { %v720_v0 = vadd.f32 %v719_v63, %v1922_v16  ;;  %v762_v1 = vmax.f32 %v728_v61, 0.0 }
 0x1a2   : > { %v760_v3 = vmax.f32 %v720_v0, 0.0  ;;  %v778_v6 = vpack.c.bf16 %v762_v1, %v761_v4 }
 0x1a4   : > { %v777_v5 = vpack.c.bf16 %v760_v3, %v759_v2 }
 0x1a6   : > { %1429 = vmatprep.mubr.bf16.mxu1 %v777_v5 }
 0x1a7   : > { %1430 = vmatmul.mubr.bf16.gmra.mxu1 %v778_v6 }
 0x22f   : > { %v1403_v9 = vpop.f32.mrf.mxu1 }
 0x230   : > { %v874_v10 = vadd.f32 %v1403_v9, %v1958_v8 }
 0x231   : > { %v865_v11 = vpop.f32.mrf.mxu1 }
 0x232   : > { %v994_v12 = vsub.f32 0.0, %v874_v10  ;;  %v866_v16 = vadd.f32 %v865_v11, %v1958_v8 }
 0x233   : > { %v1404_v13 = vpop.f32.mrf.mxu1 }
 0x234   : > { %v1028_v51 = vmul.f32 1.442695, %v994_v12  ;;  %v992_v52 = vsub.f32 0.0, %v866_v16  ;;  %v877_v14 = vadd.f32 %v1404_v13, %v1958_v8 }
 0x235   : > { %v868_v15 = vpop.f32.mrf.mxu1 }
 0x236   : > { %1493 = vpow2.f32 %v1028_v51  ;;  %v1024_v17 = vmul.f32 1.442695, %v992_v52  ;;  %v995_v18 = vsub.f32 0.0, %v877_v14  ;;  %v869_v47 = vadd.f32 %v868_v15, %v1958_v8 }
 0x237   : > { %v1407_v49 = vpop.f32.mrf.mxu1 }
 0x238   : > { %1495 = vpow2.f32 %v1024_v17  ;;  %v1030_v19 = vmul.f32 1.442695, %v995_v18  ;;  %v993_v20 = vsub.f32 0.0, %v869_v47  ;;  %v890_v21 = vadd.f32 %v1407_v49, %v1958_v8 }
 0x239   : > { %v881_v22 = vpop.f32.mrf.mxu1 }
 0x23a   : > { %1497 = vpow2.f32 %v1030_v19  ;;  %v1026_v23 = vmul.f32 1.442695, %v993_v20  ;;  %v998_v24 = vsub.f32 0.0, %v890_v21  ;;  %v882_v25 = vadd.f32 %v881_v22, %v1958_v8 }
 0x23b   : > { %v1408_v26 = vpop.f32.mrf.mxu1 }
 0x23c   : > { %1499 = vpow2.f32 %v1026_v23  ;;  %v1036_v27 = vmul.f32 1.442695, %v998_v24  ;;  %v996_v28 = vsub.f32 0.0, %v882_v25  ;;  %v893_v29 = vadd.f32 %v1408_v26, %v1958_v8 }
 0x23d   : > { %v884_v30 = vpop.f32.mrf.mxu1 }
 0x23e   : > { %1501 = vpow2.f32 %v1036_v27  ;;  %v1032_v31 = vmul.f32 1.442695, %v996_v28  ;;  %v999_v32 = vsub.f32 0.0, %v893_v29  ;;  %v885_v33 = vadd.f32 %v884_v30, %v1958_v8 }
 0x23f   : > { %v1411_v34 = vpop.f32.mrf.mxu1 }
 0x240   : > { %1503 = vpow2.f32 %v1032_v31  ;;  %v1038_v35 = vmul.f32 1.442695, %v999_v32  ;;  %v997_v36 = vsub.f32 0.0, %v885_v33  ;;  %v906_v37 = vadd.f32 %v1411_v34, %v1958_v8 }
 0x241   : > { %v897_v38 = vpop.f32.mrf.mxu1 }
 0x242   : > { %1505 = vpow2.f32 %v1038_v35  ;;  %v1034_v39 = vmul.f32 1.442695, %v997_v36  ;;  %v1002_v40 = vsub.f32 0.0, %v906_v37  ;;  %v898_v41 = vadd.f32 %v897_v38, %v1958_v8 }
 0x243   : > { %v1494_v42 = vpop.eup %1493  ;;  %v1412_v43 = vpop.f32.mrf.mxu1 }
 0x244   : > { %v1090_v44 = vadd.f32 1.0, %v1494_v42  ;;  %1507 = vpow2.f32 %v1034_v39  ;;  %v1044_v45 = vmul.f32 1.442695, %v1002_v40  ;;  %v1000_v46 = vsub.f32 0.0, %v898_v41 }
 0x245   : > { %v1496_v48 = vpop.eup %1495  ;;  %v909_v50 = vadd.f32 %v1412_v43, %v1958_v8  ;;  %v900_v53 = vpop.f32.mrf.mxu1 }
 0x246   : > { %1509 = vrcp.f32 %v1090_v44  ;;  %v1088_v54 = vadd.f32 1.0, %v1496_v48  ;;  %v1040_v55 = vmul.f32 1.442695, %v1000_v46  ;;  %v901_v56 = vadd.f32 %v900_v53, %v1958_v8 }
 0x247   : > { %v1498_v57 = vpop.eup %1497  ;;  %1511 = vpow2.f32 %v1044_v45  ;;  %v1003_v58 = vsub.f32 0.0, %v909_v50  ;;  %v1415_v59 = vpop.f32.mrf.mxu1 }
 0x248   : > { %1513 = vrcp.f32 %v1088_v54  ;;  %v1091_v60 = vadd.f32 1.0, %v1498_v57  ;;  %v1001_v61 = vsub.f32 0.0, %v901_v56  ;;  %v922_v62 = vadd.f32 %v1415_v59, %v1958_v8 }
 0x249   : > { %v1500_v63 = vpop.eup %1499  ;;  %1515 = vpow2.f32 %v1040_v55  ;;  %v1046_v0 = vmul.f32 1.442695, %v1003_v58  ;;  %v913_v1 = vpop.f32.mrf.mxu1 }
 0x24a   : > { %1517 = vrcp.f32 %v1091_v60  ;;  %v1089_v2 = vadd.f32 1.0, %v1500_v63  ;;  %v1042_v3 = vmul.f32 1.442695, %v1001_v61  ;;  %v1006_v4 = vsub.f32 0.0, %v922_v62 }
 0x24b   : > { %v1502_v5 = vpop.eup %1501  ;;  %1519 = vpow2.f32 %v1046_v0  ;;  %v914_v6 = vadd.f32 %v913_v1, %v1958_v8  ;;  %v1416_v7 = vpop.f32.mrf.mxu1 }
 0x24c   : > { %1521 = vrcp.f32 %v1089_v2  ;;  %v1094_v9 = vadd.f32 1.0, %v1502_v5  ;;  %v1052_v10 = vmul.f32 1.442695, %v1006_v4  ;;  %v925_v11 = vadd.f32 %v1416_v7, %v1958_v8 }
 0x24d   : > { %v1504_v12 = vpop.eup %1503  ;;  %1523 = vpow2.f32 %v1042_v3  ;;  %v1004_v16 = vsub.f32 0.0, %v914_v6  ;;  %v916_v13 = vpop.f32.mrf.mxu1 }
 0x24e   : > { %1525 = vrcp.f32 %v1094_v9  ;;  %v1092_v51 = vadd.f32 1.0, %v1504_v12  ;;  %v1007_v52 = vsub.f32 0.0, %v925_v11  ;;  %v917_v14 = vadd.f32 %v916_v13, %v1958_v8 }
 0x24f   : > { %v1506_v15 = vpop.eup %1505  ;;  %1527 = vpow2.f32 %v1052_v10  ;;  %v1048_v17 = vmul.f32 1.442695, %v1004_v16  ;;  %v1419_v18 = vpop.f32.mrf.mxu1 }
 0x250   : > { %1529 = vrcp.f32 %v1092_v51  ;;  %v1095_v47 = vadd.f32 1.0, %v1506_v15  ;;  %v1054_v49 = vmul.f32 1.442695, %v1007_v52  ;;  %v1005_v19 = vsub.f32 0.0, %v917_v14 }
 0x251   : > { %v1508_v20 = vpop.eup %1507  ;;  %1531 = vpow2.f32 %v1048_v17  ;;  %v938_v21 = vadd.f32 %v1419_v18, %v1958_v8  ;;  %v929_v22 = vpop.f32.mrf.mxu1 }
 0x252   : > { %1533 = vrcp.f32 %v1095_v47  ;;  %v1093_v23 = vadd.f32 1.0, %v1508_v20  ;;  %v1050_v24 = vmul.f32 1.442695, %v1005_v19  ;;  %v930_v25 = vadd.f32 %v929_v22, %v1958_v8 }
 0x253   : > { %v1510_v26 = vpop.eup %1509  ;;  %1535 = vpow2.f32 %v1054_v49  ;;  %v1010_v27 = vsub.f32 0.0, %v938_v21  ;;  %v1420_v28 = vpop.f32.mrf.mxu1 }
 0x254   : > { %v1512_v29 = vpop.eup %1511  ;;  %1154 = vst [vmem:[%s1981_s29 + $0x10] sm:$0xff] %v1510_v26  ;;  %1537 = vrcp.f32 %v1093_v23  ;;  %v1008_v30 = vsub.f32 0.0, %v930_v25  ;;  %v941_v31 = vadd.f32 %v1420_v28, %v1958_v8 }
 0x255   : > { %v1514_v32 = vpop.eup %1513  ;;  %v1098_v33 = vadd.f32 1.0, %v1512_v29  ;;  %1539 = vpow2.f32 %v1050_v24  ;;  %v1060_v34 = vmul.f32 1.442695, %v1010_v27  ;;  %v932_v35 = vpop.f32.mrf.mxu1 }
 0x256   : > { %v1516_v36 = vpop.eup %1515  ;;  %1152 = vst [vmem:[%s1981_s29] sm:$0xff] %v1514_v32  ;;  %v1056_v37 = vmul.f32 1.442695, %v1008_v30  ;;  %v1011_v38 = vsub.f32 0.0, %v941_v31  ;;  %v933_v39 = vadd.f32 %v932_v35, %v1958_v8 }
 0x257   : > { %v1518_v40 = vpop.eup %1517  ;;  %1541 = vrcp.f32 %v1098_v33  ;;  %v1096_v41 = vadd.f32 1.0, %v1516_v36  ;;  %v1423_v42 = vpop.f32.mrf.mxu1 }
 0x258   : > { %v1520_v43 = vpop.eup %1519  ;;  %1155 = vst [vmem:[%s1981_s29 + $0x18] sm:$0xff] %v1518_v40  ;;  %1543 = vpow2.f32 %v1060_v34  ;;  %v1062_v44 = vmul.f32 1.442695, %v1011_v38  ;;  %v1009_v45 = vsub.f32 0.0, %v933_v39  ;;  %v954_v46 = vadd.f32 %v1423_v42, %v1958_v8 }
 0x259   : > { %v1522_v48 = vpop.eup %1521  ;;  %1545 = vrcp.f32 %v1096_v41  ;;  %v1099_v50 = vadd.f32 1.0, %v1520_v43  ;;  %v945_v53 = vpop.f32.mrf.mxu1 }
 0x25a   : > { %v1524_v54 = vpop.eup %1523  ;;  %1153 = vst [vmem:[%s1981_s29 + $0x8] sm:$0xff] %v1522_v48  ;;  %1547 = vpow2.f32 %v1056_v37  ;;  %v1058_v55 = vmul.f32 1.442695, %v1009_v45  ;;  %v1014_v56 = vsub.f32 0.0, %v954_v46  ;;  %v946_v57 = vadd.f32 %v945_v53, %v1958_v8 }
 0x25b   : > { %v1526_v58 = vpop.eup %1525  ;;  %1549 = vrcp.f32 %v1099_v50  ;;  %v1097_v59 = vadd.f32 1.0, %v1524_v54  ;;  %v1424_v60 = vpop.f32.mrf.mxu1 }
 0x25c   : > { %v1528_v61 = vpop.eup %1527  ;;  %1158 = vst [vmem:[%s1981_s29 + $0x30] sm:$0xff] %v1526_v58  ;;  %1551 = vpow2.f32 %v1062_v44  ;;  %v1068_v62 = vmul.f32 1.442695, %v1014_v56  ;;  %v1012_v63 = vsub.f32 0.0, %v946_v57  ;;  %v957_v0 = vadd.f32 %v1424_v60, %v1958_v8 }
 0x25d   : > { %v1530_v1 = vpop.eup %1529  ;;  %1553 = vrcp.f32 %v1097_v59  ;;  %v1102_v2 = vadd.f32 1.0, %v1528_v61  ;;  %v948_v3 = vpop.f32.mrf.mxu1 }
 0x25e   : > { %v1532_v4 = vpop.eup %1531  ;;  %1156 = vst [vmem:[%s1981_s29 + $0x20] sm:$0xff] %v1530_v1  ;;  %1555 = vpow2.f32 %v1058_v55  ;;  %v1064_v5 = vmul.f32 1.442695, %v1012_v63  ;;  %v1015_v6 = vsub.f32 0.0, %v957_v0  ;;  %v949_v7 = vadd.f32 %v948_v3, %v1958_v8 }
 0x25f   : > { %v1534_v9 = vpop.eup %1533  ;;  %1557 = vrcp.f32 %v1102_v2  ;;  %v1100_v10 = vadd.f32 1.0, %v1532_v4  ;;  %v1427_v11 = vpop.f32.mrf.mxu1 }
 0x260   : > { %v1536_v12 = vpop.eup %1535  ;;  %1159 = vst [vmem:[%s1981_s29 + $0x38] sm:$0xff] %v1534_v9  ;;  %1559 = vpow2.f32 %v1068_v62  ;;  %v1070_v16 = vmul.f32 1.442695, %v1015_v6  ;;  %v1013_v13 = vsub.f32 0.0, %v949_v7  ;;  %v970_v51 = vadd.f32 %v1427_v11, %v1958_v8 }
 0x261   : > { %v1538_v52 = vpop.eup %1537  ;;  %1561 = vrcp.f32 %v1100_v10  ;;  %v1103_v14 = vadd.f32 1.0, %v1536_v12  ;;  %v961_v15 = vpop.f32.mrf.mxu1 }
 0x262   : > { %v1540_v17 = vpop.eup %1539  ;;  %1157 = vst [vmem:[%s1981_s29 + $0x28] sm:$0xff] %v1538_v52  ;;  %1563 = vpow2.f32 %v1064_v5  ;;  %v1066_v18 = vmul.f32 1.442695, %v1013_v13  ;;  %v1018_v47 = vsub.f32 0.0, %v970_v51  ;;  %v962_v49 = vadd.f32 %v961_v15, %v1958_v8 }
 0x263   : > { %1565 = vrcp.f32 %v1103_v14  ;;  %v1101_v19 = vadd.f32 1.0, %v1540_v17  ;;  %v1428_v20 = vpop.f32.mrf.mxu1 }
 0x264   : > { %v1542_v21 = vpop.eup %1541  ;;  %1567 = vpow2.f32 %v1070_v16  ;;  %v1076_v22 = vmul.f32 1.442695, %v1018_v47  ;;  %v1016_v23 = vsub.f32 0.0, %v962_v49  ;;  %v973_v24 = vadd.f32 %v1428_v20, %v1958_v8 }
 0x265   : > { %v1544_v25 = vpop.eup %1543  ;;  %1162 = vst [vmem:[%s1981_s29 + $0x50] sm:$0xff] %v1542_v21  ;;  %1569 = vrcp.f32 %v1101_v19  ;;  %v964_v26 = vpop.f32.mrf.mxu1 }
 0x266   : > { %v1546_v27 = vpop.eup %1545  ;;  %v1106_v28 = vadd.f32 1.0, %v1544_v25  ;;  %1571 = vpow2.f32 %v1066_v18  ;;  %v1072_v29 = vmul.f32 1.442695, %v1016_v23  ;;  %v1019_v30 = vsub.f32 0.0, %v973_v24 }
 0x267   : > { %v1548_v31 = vpop.eup %1547  ;;  %1160 = vst [vmem:[%s1981_s29 + $0x40] sm:$0xff] %v1546_v27  ;;  %1573 = vpow2.f32 %v1076_v22  ;;  %v965_v32 = vadd.f32 %v964_v26, %v1958_v8  ;;  %v1431_v33 = vpop.f32.mrf.mxu1 }
 0x268   : > { %v1550_v34 = vpop.eup %1549  ;;  %1575 = vrcp.f32 %v1106_v28  ;;  %v1104_v35 = vadd.f32 1.0, %v1548_v31  ;;  %v1078_v36 = vmul.f32 1.442695, %v1019_v30  ;;  %v986_v37 = vadd.f32 %v1431_v33, %v1958_v8 }
 0x269   : > { %v1552_v38 = vpop.eup %1551  ;;  %1163 = vst [vmem:[%s1981_s29 + $0x58] sm:$0xff] %v1550_v34  ;;  %1577 = vpow2.f32 %v1072_v29  ;;  %v1017_v39 = vsub.f32 0.0, %v965_v32  ;;  %v977_v40 = vpop.f32.mrf.mxu1 }
 0x26a   : > { %v1554_v41 = vpop.eup %1553  ;;  %1579 = vrcp.f32 %v1104_v35  ;;  %v1107_v42 = vadd.f32 1.0, %v1552_v38  ;;  %v1022_v43 = vsub.f32 0.0, %v986_v37  ;;  %v978_v44 = vadd.f32 %v977_v40, %v1958_v8 }
 0x26b   : > { %v1556_v45 = vpop.eup %1555  ;;  %1161 = vst [vmem:[%s1981_s29 + $0x48] sm:$0xff] %v1554_v41  ;;  %1581 = vpow2.f32 %v1078_v36  ;;  %v1074_v46 = vmul.f32 1.442695, %v1017_v39  ;;  %v1432_v48 = vpop.f32.mrf.mxu1 }
 0x26c   : > { %v1558_v50 = vpop.eup %1557  ;;  %1583 = vrcp.f32 %v1107_v42  ;;  %v1105_v53 = vadd.f32 1.0, %v1556_v45  ;;  %v1084_v54 = vmul.f32 1.442695, %v1022_v43  ;;  %v1020_v55 = vsub.f32 0.0, %v978_v44 }
 0x26d   : > { %v1560_v56 = vpop.eup %1559  ;;  %1166 = vst [vmem:[%s1981_s29 + $0x70] sm:$0xff] %v1558_v50  ;;  %1585 = vpow2.f32 %v1074_v46  ;;  %v989_v57 = vadd.f32 %v1432_v48, %v1958_v8  ;;  %v980_v58 = vpop.f32.mrf.mxu1 }
 0x26e   : > { %v1562_v59 = vpop.eup %1561  ;;  %1587 = vrcp.f32 %v1105_v53  ;;  %v1110_v60 = vadd.f32 1.0, %v1560_v56  ;;  %v1080_v61 = vmul.f32 1.442695, %v1020_v55  ;;  %v981_v62 = vadd.f32 %v980_v58, %v1958_v8 }
 0x26f   : > { %v1564_v63 = vpop.eup %1563  ;;  %1164 = vst [vmem:[%s1981_s29 + $0x60] sm:$0xff] %v1562_v59  ;;  %1589 = vpow2.f32 %v1084_v54  ;;  %v1023_v0 = vsub.f32 0.0, %v989_v57 }
 0x270   : > { %v1566_v1 = vpop.eup %1565  ;;  %1591 = vrcp.f32 %v1110_v60  ;;  %v1108_v2 = vadd.f32 1.0, %v1564_v63  ;;  %v1021_v3 = vsub.f32 0.0, %v981_v62 }
 0x271   : > { %v1568_v4 = vpop.eup %1567  ;;  %1167 = vst [vmem:[%s1981_s29 + $0x78] sm:$0xff] %v1566_v1  ;;  %1593 = vpow2.f32 %v1080_v61  ;;  %v1086_v5 = vmul.f32 1.442695, %v1023_v0 }
 0x272   : > { %v1570_v6 = vpop.eup %1569  ;;  %1595 = vrcp.f32 %v1108_v2  ;;  %v1111_v7 = vadd.f32 1.0, %v1568_v4  ;;  %v1082_v9 = vmul.f32 1.442695, %v1021_v3 }
 0x273   : > { %v1572_v10 = vpop.eup %1571  ;;  %1165 = vst [vmem:[%s1981_s29 + $0x68] sm:$0xff] %v1570_v6  ;;  %1597 = vpow2.f32 %v1086_v5 }
 0x274   : > { %v1574_v8 = vpop.eup %1573  ;;  %1599 = vrcp.f32 %v1111_v7  ;;  %v1109_v11 = vadd.f32 1.0, %v1572_v10 }
 0x275   : > { %v1576_v12 = vpop.eup %1575  ;;  %v1114_v16 = vadd.f32 1.0, %v1574_v8  ;;  %1601 = vpow2.f32 %v1082_v9 }
 0x276   : > { %v1578_v13 = vpop.eup %1577  ;;  %1170 = vst [vmem:[%s1981_s29 + $0x90] sm:$0xff] %v1576_v12  ;;  %1603 = vrcp.f32 %v1109_v11 }
 0x277   : > { %v1580_v51 = vpop.eup %1579  ;;  %1605 = vrcp.f32 %v1114_v16  ;;  %v1112_v52 = vadd.f32 1.0, %v1578_v13 }
 0x278   : > { %v1582_v14 = vpop.eup %1581  ;;  %1168 = vst [vmem:[%s1981_s29 + $0x80] sm:$0xff] %v1580_v51 }
 0x279   : > { %v1584_v15 = vpop.eup %1583  ;;  %1607 = vrcp.f32 %v1112_v52  ;;  %v1115_v17 = vadd.f32 1.0, %v1582_v14 }
 0x27a   : > { %v1586_v18 = vpop.eup %1585  ;;  %1171 = vst [vmem:[%s1981_s29 + $0x98] sm:$0xff] %v1584_v15 }
 0x27b   : > { %v1588_v47 = vpop.eup %1587  ;;  %1609 = vrcp.f32 %v1115_v17  ;;  %v1113_v49 = vadd.f32 1.0, %v1586_v18 }
 0x27c   : > { %v1590_v19 = vpop.eup %1589  ;;  %1169 = vst [vmem:[%s1981_s29 + $0x88] sm:$0xff] %v1588_v47 }
 0x27d   : > { %v1592_v20 = vpop.eup %1591  ;;  %1611 = vrcp.f32 %v1113_v49  ;;  %v1118_v21 = vadd.f32 1.0, %v1590_v19 }
 0x27e   : > { %v1594_v22 = vpop.eup %1593  ;;  %1174 = vst [vmem:[%s1981_s29 + $0xb0] sm:$0xff] %v1592_v20 }
 0x27f   : > { %v1596_v23 = vpop.eup %1595  ;;  %1613 = vrcp.f32 %v1118_v21  ;;  %v1116_v24 = vadd.f32 1.0, %v1594_v22 }
 0x280   : > { %v1598_v25 = vpop.eup %1597  ;;  %1172 = vst [vmem:[%s1981_s29 + $0xa0] sm:$0xff] %v1596_v23 }
 0x281   : > { %v1600_v26 = vpop.eup %1599  ;;  %1615 = vrcp.f32 %v1116_v24  ;;  %v1119_v27 = vadd.f32 1.0, %v1598_v25 }
 0x282   : > { %v1602_v28 = vpop.eup %1601  ;;  %1175 = vst [vmem:[%s1981_s29 + $0xb8] sm:$0xff] %v1600_v26 }
 0x283   : > { %v1604_v29 = vpop.eup %1603  ;;  %1617 = vrcp.f32 %v1119_v27  ;;  %v1117_v30 = vadd.f32 1.0, %v1602_v28 }
 0x284   : > { %v1606_v31 = vpop.eup %1605  ;;  %1173 = vst [vmem:[%s1981_s29 + $0xa8] sm:$0xff] %v1604_v29 }
 0x285   : > { %1178 = vst [vmem:[%s1981_s29 + $0xd0] sm:$0xff] %v1606_v31  ;;  %1619 = vrcp.f32 %v1117_v30 }
 0x286   : > { %v1608_v32 = vpop.eup %1607 }
 0x287   : > { %1176 = vst [vmem:[%s1981_s29 + $0xc0] sm:$0xff] %v1608_v32 }
 0x288   : > { %v1610_v33 = vpop.eup %1609 }
 0x289   : > { %1179 = vst [vmem:[%s1981_s29 + $0xd8] sm:$0xff] %v1610_v33 }
 0x28a   : > { %v1612_v34 = vpop.eup %1611 }
 0x28b   : > { %1177 = vst [vmem:[%s1981_s29 + $0xc8] sm:$0xff] %v1612_v34 }
 0x28c   : > { %v1614_v35 = vpop.eup %1613 }
 0x28d   : > { %1182 = vst [vmem:[%s1981_s29 + $0xf0] sm:$0xff] %v1614_v35 }
 0x28e   : > { %v1616_v36 = vpop.eup %1615 }
 0x28f   : > { %1180 = vst [vmem:[%s1981_s29 + $0xe0] sm:$0xff] %v1616_v36 }
 0x290   : > { %v1618_v37 = vpop.eup %1617 }
 0x291   : > { %1183 = vst [vmem:[%s1981_s29 + $0xf8] sm:$0xff] %v1618_v37 }
 0x292   : > { %v1620_v38 = vpop.eup %1619 }
 0x293   : > { %1181 = vst [vmem:[%s1981_s29 + $0xe8] sm:$0xff] %v1620_v38 }
 0x294   : > { %1634 = shalt.err (!%p1631_p3)
}
 0x295   : > { %s1635_s17 = scalar_lea.hbm %s2032_s7, 4096  ;;  %s1639_s24 = scalar_lea.hbm %s2083_s3, 8192 }
 0x296   : > { %p1636_p4 = scmp.ne.s32.totalorder %s2032_s7, %s1635_s17  ;;  %p1640_p9 = scmp.lt.s32.totalorder %s2032_s7, %s2083_s3 }
 0x297   : > { %p1641_p10 = scmp.lt.s32.totalorder %s1639_s24, %s1635_s17 }
 0x298   : > { %p1637_p7 = pnand %p1636_p4, %p1745_p5 }
 0x299   : > { %p1642_p11 = por %p1641_p10, %p1640_p9 }
 0x29a   : > { %p1638_p8 = pneg %p1637_p7 }
 0x29c   : > { %p1643_p12 = pnand %p1642_p11, %p1638_p8 }
 0x29e   : > { %1646 = shalt.err (!%p1643_p12)
}
 0x29f   : > { %s1685_s27 = smov 128   ;;  %s1686_s28 = smov 8  }
 0x2a0   : > { %1433 = dma.vmem_to_hbm [thread:$0]  (%p1745_p5), %s2034_s4, 4096, %s2032_s7, %s2040_s8, %s1685_s27, %s1685_s27, %s1686_s28  }
 0x2a1 PF: > { %p1439_p13 = scmp.ge.s32.totalorder %s1681_s15, 2  ;;  %s1213_s29 = sand.u32 1, %s1669_s12  }
 0x2a2   : > { %s1214_s30 = scalar_lea.sflag [#allocation3], %s1213_s29 }
 0x2a3   : > { %p1436_p0 = pnand %p1439_p13, %p1749_p6 }
 0x2a5   : > { %p1437_p1 = pneg %p1436_p0 }
 0x2a7   : > { %1664 = dma.done.wait (%p1437_p1), %s1214_s30, 4096  }
 0x2a8   : > { %1666 = vsyncadd (%p1437_p1), %s1214_s30, 4294963200  ;;  %p13_p2 = scmp.ge.s32.totalorder %s1732_s18, 4   ;;  %s2086_s12 = smov %s1673_s13 }
 0x2a9   : > { %s2087_s13 = smov %s1677_s14  ;;  %s2088_s14 = smov %s1743_s21 }
 0x2aa   : > { %s2089_s15 = smov %s1732_s18  ;;  %15 = sbr.rel (!%p13_p2) target bundleno = 3 (0x3), region = 67 }
 0x2af   :  { %1219 = vsyncpa [#allocation3], 1 }
 0x2b0   :  { %1221 = vsyncpa [#allocation3 + $0x1], 1 }

</bundles_post_ra>
